<compile_context>
chip_gen: v6e
topology: v6e:2x2x1
jax: 0.10.0
libtpu: 0.0.40
codegen_flags: <defaults>
</compile_context>

<pallas_src>
import functools

import jax
import jax.numpy as jnp
from jax.experimental import pallas as pl
from jax.experimental.pallas import tpu as pltpu


def _edge_refine_kernel(x_ref, masks_ref, w_ref, o_ref, patch_ref,
                        *, B, H, W, C, tap_stride):
    # x_ref    : (B, C, H*W)        input, channels on sublanes, spatial on lanes
    # masks_ref: (9, B*H*W)   f32   per-tap boundary-validity masks
    # w_ref    : (2, C, K)    f32   packed conv weights (+ folded bias column)
    # o_ref    : (B, C, H*W)        output
    # patch_ref: (K, B*H*W)   f32   VMEM scratch holding the im2col patch matrix
    HW = H * W
    N = B * HW
    ones_row = 9 * tap_stride

    # Merge the batch onto the lane axis: (B, C, HW) -> (C, B*HW).
    # HW = 256 is a multiple of 128, so this concat is pure vreg placement.
    x = jnp.concatenate([x_ref[b].astype(jnp.float32) for b in range(B)],
                        axis=1)

    # Zero the patch scratch once.  The never-written pad rows have zero weight
    # columns, but they still enter the MXU contraction, so they must hold
    # finite values (uninitialized VMEM could decode as NaN/Inf).
    patch_ref[...] = jnp.zeros_like(patch_ref)
    # Ones row drives the folded bias column of the packed weights.
    patch_ref[pl.ds(ones_row, 1), :] = jnp.ones((1, N), jnp.float32)

    # Per-tap boundary masks, shared by both convs.
    mask_rows = [masks_ref[pl.ds(k, 1), :] for k in range(9)]

    offsets = [(dy, dx) for dy in (-1, 0, 1) for dx in (-1, 0, 1)]

    def assemble_taps(z):
        # Write the 9 shifted/masked copies of z at 8-sublane-aligned offsets,
        # so the C=4 rows land on sublanes 0..3 of their own tile (no sublane
        # relayout).  Lane rolls go to the XLU via pltpu.roll; the edge masks
        # zero every wrapped-around value, which realizes the 3x3 zero padding
        # (including across the batch seam on the merged lane axis).
        for k, (dy, dx) in enumerate(offsets):
            off = dy * W + dx
            if off == 0:
                t = z
            else:
                t = pltpu.roll(z, (-off) % N, axis=1) * mask_rows[k]
            patch_ref[pl.ds(k * tap_stride, C), :] = t

    def conv3x3(z, w):
        assemble_taps(z)
        # One MXU matmul per conv: (C, K) @ (K, B*HW) -> (C, B*HW).
        # Bias is applied via the ones row / bias column.
        return jnp.dot(w, patch_ref[...], preferred_element_type=jnp.float32)

    h = jnp.maximum(conv3x3(x, w_ref[0]), 0.0)     # conv1 + ReLU
    y = jax.nn.sigmoid(conv3x3(h, w_ref[1]))       # conv2 + Sigmoid

    # Split lanes back into per-batch (C, HW) tiles (256-lane aligned slices).
    for b in range(B):
        o_ref[b] = y[:, b * HW:(b + 1) * HW].astype(o_ref.dtype)


def edge_refinement(x_nchw, w1, b1, w2, b2):
    """x_nchw: (B, C, H, W); w1, w2: (C, C, 3, 3) torch OIHW; b1, b2: (C,)."""
    B, C, H, W = x_nchw.shape
    HW = H * W
    N = B * HW
    tap_stride = ((C + 7) // 8) * 8          # 8-sublane-aligned tap blocks
    K = 9 * tap_stride + 8                   # + block holding the ones/bias row

    x3 = x_nchw.reshape(B, C, HW)            # no transpose, no spatial padding

    def pack(w, b):
        # (O, I, 3, 3) -> (O, tap, I); tap order (kh, kw) matches the kernel's
        # (dy, dx) enumeration.  Pad each tap's input-channel block to
        # tap_stride columns and append the bias column (+ zero padding).
        wt = jnp.transpose(w, (0, 2, 3, 1)).reshape(C, 9, C)
        wt = jnp.pad(wt, ((0, 0), (0, 0), (0, tap_stride - C)))
        wt = wt.reshape(C, 9 * tap_stride).astype(jnp.float32)
        tail = jnp.zeros((C, K - 9 * tap_stride), jnp.float32)
        tail = tail.at[:, 0].set(b.astype(jnp.float32))   # bias <-> ones row
        return jnp.concatenate([wt, tail], axis=1)         # (C, K)

    wk = jnp.stack([pack(w1, b1), pack(w2, b2)], axis=0)    # (2, C, K)

    # (9, B*HW) per-tap validity masks: 1 where the shifted source pixel is a
    # real in-image neighbour, 0 where zero padding applies (also suppresses
    # batch-seam leakage of the merged-lane rolls).
    p = jnp.arange(N, dtype=jnp.int32) % HW
    rows, cols = p // W, p % W
    mask_list = []
    for dy in (-1, 0, 1):
        for dx in (-1, 0, 1):
            ok = jnp.ones((N,), jnp.bool_)
            if dy == -1:
                ok = ok & (rows >= 1)
            elif dy == 1:
                ok = ok & (rows < H - 1)
            if dx == -1:
                ok = ok & (cols >= 1)
            elif dx == 1:
                ok = ok & (cols < W - 1)
            mask_list.append(ok)
    masks = jnp.stack(mask_list, axis=0).astype(jnp.float32)   # (9, N)

    kernel = functools.partial(_edge_refine_kernel, B=B, H=H, W=W, C=C,
                               tap_stride=tap_stride)

    out = pl.pallas_call(
        kernel,
        out_shape=jax.ShapeDtypeStruct((B, C, HW), x_nchw.dtype),
        grid_spec=pltpu.PrefetchScalarGridSpec(
            num_scalar_prefetch=0,
            grid=(1,),                          # whole problem in one step
            in_specs=[
                pl.BlockSpec((B, C, HW), lambda i: (0, 0, 0)),   # x
                pl.BlockSpec((9, N), lambda i: (0, 0)),          # edge masks
                pl.BlockSpec((2, C, K), lambda i: (0, 0, 0)),    # packed weights
            ],
            out_specs=pl.BlockSpec((B, C, HW), lambda i: (0, 0, 0)),
            scratch_shapes=[pltpu.VMEM((K, N), jnp.float32)],    # im2col patches
        ),
        compiler_params=pltpu.CompilerParams(
            dimension_semantics=("arbitrary",)),
    )(x3, masks, wk)

    return out.reshape(B, C, H, W)


def ref_forward(x_nchw, w1, b1, w2, b2):
    """Pure-JAX reference matching PyTorch semantics (NCHW, OIHW)."""
    dn = ('NCHW', 'OIHW', 'NCHW')
    h = jax.lax.conv_general_dilated(x_nchw, w1, (1, 1), ((1, 1), (1, 1)),
                                     dimension_numbers=dn)
    h = jax.nn.relu(h + b1.reshape(1, -1, 1, 1))
    y = jax.lax.conv_general_dilated(h, w2, (1, 1), ((1, 1), (1, 1)),
                                     dimension_numbers=dn)
    return jax.nn.sigmoid(y + b2.reshape(1, -1, 1, 1))


if __name__ == "__main__":
    B, C, H, W = 2, 4, 16, 16

    key = jax.random.PRNGKey(0)
    kx, kw1, kb1, kw2, kb2 = jax.random.split(key, 5)

    x = jax.random.normal(kx, (B, C, H, W), dtype=jnp.float32)
    # conv weight shape: (out_c, in_c, 3, 3), PyTorch default-init-like scale
    fan_in = C * 3 * 3
    scale = 1.0 / (fan_in ** 0.5)
    w1 = jax.random.uniform(kw1, (C, C, 3, 3), jnp.float32, -scale, scale)
    b1 = jax.random.uniform(kb1, (C,), jnp.float32, -scale, scale)
    w2 = jax.random.uniform(kw2, (C, C, 3, 3), jnp.float32, -scale, scale)
    b2 = jax.random.uniform(kb2, (C,), jnp.float32, -scale, scale)

    out = edge_refinement(x, w1, b1, w2, b2)
    out = jax.block_until_ready(out)

    ref = jax.block_until_ready(ref_forward(x, w1, b1, w2, b2))
    if not jnp.allclose(out, ref, atol=1e-4, rtol=1e-4):
        raise AssertionError("Pallas kernel output does not match reference")

    print("KERNEL_OK")
</pallas_src>

<mosaic_0001>
module attributes {stable_mosaic.version = 11 : i64} {
  func.func @_edge_refine_kernel(%arg0: i32, %arg1: memref<2x4x256xf32, #tpu.memory_space<vmem>>, %arg2: memref<9x512xf32, #tpu.memory_space<vmem>>, %arg3: memref<2x4x80xf32, #tpu.memory_space<vmem>>, %arg4: memref<2x4x256xf32, #tpu.memory_space<vmem>>, %arg5: memref<80x512xf32, #tpu.memory_space<vmem>>) attributes {dimension_semantics = [#tpu.dimension_semantics<arbitrary>], iteration_bounds = array<i64: 1>, scalar_prefetch = 0 : i64, scratch_operands = 1 : i64, tpu.core_type = #tpu.core_type<tc>, window_params = [{pipeline_mode = #tpu.pipeline_mode<synchronous>, transform_indices = @transform_0, window_bounds = array<i64: 2, 4, 256>}, {pipeline_mode = #tpu.pipeline_mode<synchronous>, transform_indices = @transform_1, window_bounds = array<i64: 9, 512>}, {pipeline_mode = #tpu.pipeline_mode<synchronous>, transform_indices = @transform_2, window_bounds = array<i64: 2, 4, 80>}, {pipeline_mode = #tpu.pipeline_mode<synchronous>, transform_indices = @transform_3, window_bounds = array<i64: 2, 4, 256>}]} {
    %c0 = arith.constant 0 : index
    %c0_0 = arith.constant 0 : index
    %c0_1 = arith.constant 0 : index
    %0 = vector.load %arg1[%c0, %c0_0, %c0_1] : memref<2x4x256xf32, #tpu.memory_space<vmem>>, vector<1x4x256xf32>
    %1 = vector.shape_cast %0 : vector<1x4x256xf32> to vector<4x256xf32>
    %c1 = arith.constant 1 : index
    %c0_2 = arith.constant 0 : index
    %c0_3 = arith.constant 0 : index
    %2 = vector.load %arg1[%c1, %c0_2, %c0_3] : memref<2x4x256xf32, #tpu.memory_space<vmem>>, vector<1x4x256xf32>
    %3 = vector.shape_cast %2 : vector<1x4x256xf32> to vector<4x256xf32>
    %4 = tpu.concatenate %1, %3 in 1 : vector<4x256xf32>, vector<4x256xf32> -> vector<4x512xf32>
    %cst = arith.constant 0.000000e+00 : f32
    %5 = vector.broadcast %cst : f32 to vector<80x512xf32>
    %c0_4 = arith.constant 0 : index
    %c0_5 = arith.constant 0 : index
    %6 = vector.load %arg5[%c0_4, %c0_5] : memref<80x512xf32, #tpu.memory_space<vmem>>, vector<80x512xf32>
    tpu.vector_store %arg5[%c0_4, %c0_5], %5 {strides = array<i32>} : memref<80x512xf32, #tpu.memory_space<vmem>>, vector<80x512xf32>,
    %cst_6 = arith.constant 1.000000e+00 : f32
    %7 = vector.broadcast %cst_6 : f32 to vector<1x512xf32>
    %c72 = arith.constant 72 : index
    %c0_7 = arith.constant 0 : index
    %8 = vector.load %arg5[%c72, %c0_7] : memref<80x512xf32, #tpu.memory_space<vmem>>, vector<1x512xf32>
    tpu.vector_store %arg5[%c72, %c0_7], %7 {strides = array<i32>} : memref<80x512xf32, #tpu.memory_space<vmem>>, vector<1x512xf32>,
    %c0_8 = arith.constant 0 : index
    %c0_9 = arith.constant 0 : index
    %9 = vector.load %arg2[%c0_8, %c0_9] : memref<9x512xf32, #tpu.memory_space<vmem>>, vector<1x512xf32>
    %c1_10 = arith.constant 1 : index
    %c0_11 = arith.constant 0 : index
    %10 = vector.load %arg2[%c1_10, %c0_11] : memref<9x512xf32, #tpu.memory_space<vmem>>, vector<1x512xf32>
    %c2 = arith.constant 2 : index
    %c0_12 = arith.constant 0 : index
    %11 = vector.load %arg2[%c2, %c0_12] : memref<9x512xf32, #tpu.memory_space<vmem>>, vector<1x512xf32>
    %c3 = arith.constant 3 : index
    %c0_13 = arith.constant 0 : index
    %12 = vector.load %arg2[%c3, %c0_13] : memref<9x512xf32, #tpu.memory_space<vmem>>, vector<1x512xf32>
    %c5 = arith.constant 5 : index
    %c0_14 = arith.constant 0 : index
    %13 = vector.load %arg2[%c5, %c0_14] : memref<9x512xf32, #tpu.memory_space<vmem>>, vector<1x512xf32>
    %c6 = arith.constant 6 : index
    %c0_15 = arith.constant 0 : index
    %14 = vector.load %arg2[%c6, %c0_15] : memref<9x512xf32, #tpu.memory_space<vmem>>, vector<1x512xf32>
    %c7 = arith.constant 7 : index
    %c0_16 = arith.constant 0 : index
    %15 = vector.load %arg2[%c7, %c0_16] : memref<9x512xf32, #tpu.memory_space<vmem>>, vector<1x512xf32>
    %c8 = arith.constant 8 : index
    %c0_17 = arith.constant 0 : index
    %16 = vector.load %arg2[%c8, %c0_17] : memref<9x512xf32, #tpu.memory_space<vmem>>, vector<1x512xf32>
    %c0_18 = arith.constant 0 : index
    %c0_19 = arith.constant 0 : index
    %c0_20 = arith.constant 0 : index
    %17 = vector.load %arg3[%c0_18, %c0_19, %c0_20] : memref<2x4x80xf32, #tpu.memory_space<vmem>>, vector<1x4x80xf32>
    %18 = vector.shape_cast %17 : vector<1x4x80xf32> to vector<4x80xf32>
    %c17_i32 = arith.constant 17 : i32
    %19 = tpu.dynamic_rotate %4 by %c17_i32 dim 1 : vector<4x512xf32>, i32 -> vector<4x512xf32>
    %20 = vector.broadcast %9 : vector<1x512xf32> to vector<4x512xf32>
    %21 = arith.mulf %19, %20 : vector<4x512xf32>
    %c0_21 = arith.constant 0 : index
    %c0_22 = arith.constant 0 : index
    %22 = vector.load %arg5[%c0_21, %c0_22] : memref<80x512xf32, #tpu.memory_space<vmem>>, vector<4x512xf32>
    tpu.vector_store %arg5[%c0_21, %c0_22], %21 {strides = array<i32>} : memref<80x512xf32, #tpu.memory_space<vmem>>, vector<4x512xf32>,
    %c16_i32 = arith.constant 16 : i32
    %23 = tpu.dynamic_rotate %4 by %c16_i32 dim 1 : vector<4x512xf32>, i32 -> vector<4x512xf32>
    %24 = vector.broadcast %10 : vector<1x512xf32> to vector<4x512xf32>
    %25 = arith.mulf %23, %24 : vector<4x512xf32>
    %c8_23 = arith.constant 8 : index
    %c0_24 = arith.constant 0 : index
    %26 = vector.load %arg5[%c8_23, %c0_24] : memref<80x512xf32, #tpu.memory_space<vmem>>, vector<4x512xf32>
    tpu.vector_store %arg5[%c8_23, %c0_24], %25 {strides = array<i32>} : memref<80x512xf32, #tpu.memory_space<vmem>>, vector<4x512xf32>,
    %c15_i32 = arith.constant 15 : i32
    %27 = tpu.dynamic_rotate %4 by %c15_i32 dim 1 : vector<4x512xf32>, i32 -> vector<4x512xf32>
    %28 = vector.broadcast %11 : vector<1x512xf32> to vector<4x512xf32>
    %29 = arith.mulf %27, %28 : vector<4x512xf32>
    %c16 = arith.constant 16 : index
    %c0_25 = arith.constant 0 : index
    %30 = vector.load %arg5[%c16, %c0_25] : memref<80x512xf32, #tpu.memory_space<vmem>>, vector<4x512xf32>
    tpu.vector_store %arg5[%c16, %c0_25], %29 {strides = array<i32>} : memref<80x512xf32, #tpu.memory_space<vmem>>, vector<4x512xf32>,
    %c1_i32 = arith.constant 1 : i32
    %31 = tpu.dynamic_rotate %4 by %c1_i32 dim 1 : vector<4x512xf32>, i32 -> vector<4x512xf32>
    %32 = vector.broadcast %12 : vector<1x512xf32> to vector<4x512xf32>
    %33 = arith.mulf %31, %32 : vector<4x512xf32>
    %c24 = arith.constant 24 : index
    %c0_26 = arith.constant 0 : index
    %34 = vector.load %arg5[%c24, %c0_26] : memref<80x512xf32, #tpu.memory_space<vmem>>, vector<4x512xf32>
    tpu.vector_store %arg5[%c24, %c0_26], %33 {strides = array<i32>} : memref<80x512xf32, #tpu.memory_space<vmem>>, vector<4x512xf32>,
    %c32 = arith.constant 32 : index
    %c0_27 = arith.constant 0 : index
    %35 = vector.load %arg5[%c32, %c0_27] : memref<80x512xf32, #tpu.memory_space<vmem>>, vector<4x512xf32>
    tpu.vector_store %arg5[%c32, %c0_27], %4 {strides = array<i32>} : memref<80x512xf32, #tpu.memory_space<vmem>>, vector<4x512xf32>,
    %c511_i32 = arith.constant 511 : i32
    %36 = tpu.dynamic_rotate %4 by %c511_i32 dim 1 : vector<4x512xf32>, i32 -> vector<4x512xf32>
    %37 = vector.broadcast %13 : vector<1x512xf32> to vector<4x512xf32>
    %38 = arith.mulf %36, %37 : vector<4x512xf32>
    %c40 = arith.constant 40 : index
    %c0_28 = arith.constant 0 : index
    %39 = vector.load %arg5[%c40, %c0_28] : memref<80x512xf32, #tpu.memory_space<vmem>>, vector<4x512xf32>
    tpu.vector_store %arg5[%c40, %c0_28], %38 {strides = array<i32>} : memref<80x512xf32, #tpu.memory_space<vmem>>, vector<4x512xf32>,
    %c497_i32 = arith.constant 497 : i32
    %40 = tpu.dynamic_rotate %4 by %c497_i32 dim 1 : vector<4x512xf32>, i32 -> vector<4x512xf32>
    %41 = vector.broadcast %14 : vector<1x512xf32> to vector<4x512xf32>
    %42 = arith.mulf %40, %41 : vector<4x512xf32>
    %c48 = arith.constant 48 : index
    %c0_29 = arith.constant 0 : index
    %43 = vector.load %arg5[%c48, %c0_29] : memref<80x512xf32, #tpu.memory_space<vmem>>, vector<4x512xf32>
    tpu.vector_store %arg5[%c48, %c0_29], %42 {strides = array<i32>} : memref<80x512xf32, #tpu.memory_space<vmem>>, vector<4x512xf32>,
    %c496_i32 = arith.constant 496 : i32
    %44 = tpu.dynamic_rotate %4 by %c496_i32 dim 1 : vector<4x512xf32>, i32 -> vector<4x512xf32>
    %45 = vector.broadcast %15 : vector<1x512xf32> to vector<4x512xf32>
    %46 = arith.mulf %44, %45 : vector<4x512xf32>
    %c56 = arith.constant 56 : index
    %c0_30 = arith.constant 0 : index
    %47 = vector.load %arg5[%c56, %c0_30] : memref<80x512xf32, #tpu.memory_space<vmem>>, vector<4x512xf32>
    tpu.vector_store %arg5[%c56, %c0_30], %46 {strides = array<i32>} : memref<80x512xf32, #tpu.memory_space<vmem>>, vector<4x512xf32>,
    %c495_i32 = arith.constant 495 : i32
    %48 = tpu.dynamic_rotate %4 by %c495_i32 dim 1 : vector<4x512xf32>, i32 -> vector<4x512xf32>
    %49 = vector.broadcast %16 : vector<1x512xf32> to vector<4x512xf32>
    %50 = arith.mulf %48, %49 : vector<4x512xf32>
    %c64 = arith.constant 64 : index
    %c0_31 = arith.constant 0 : index
    %51 = vector.load %arg5[%c64, %c0_31] : memref<80x512xf32, #tpu.memory_space<vmem>>, vector<4x512xf32>
    tpu.vector_store %arg5[%c64, %c0_31], %50 {strides = array<i32>} : memref<80x512xf32, #tpu.memory_space<vmem>>, vector<4x512xf32>,
    %c0_32 = arith.constant 0 : index
    %c0_33 = arith.constant 0 : index
    %52 = vector.load %arg5[%c0_32, %c0_33] : memref<80x512xf32, #tpu.memory_space<vmem>>, vector<80x512xf32>
    %cst_34 = arith.constant dense<0.000000e+00> : vector<4x512xf32>
    %53 = tpu.matmul %18, %52, %cst_34 {dimension_numbers = #tpu.dot_dimension_numbers<[1], [0], [0], [1], [0, 0, 1, 1], [], []>} : vector<4x80xf32>, vector<80x512xf32>, vector<4x512xf32> -> vector<4x512xf32>
    %cst_35 = arith.constant 0.000000e+00 : f32
    %54 = vector.broadcast %cst_35 : f32 to vector<4x512xf32>
    %55 = arith.maximumf %53, %54 : vector<4x512xf32>
    %c1_36 = arith.constant 1 : index
    %c0_37 = arith.constant 0 : index
    %c0_38 = arith.constant 0 : index
    %56 = vector.load %arg3[%c1_36, %c0_37, %c0_38] : memref<2x4x80xf32, #tpu.memory_space<vmem>>, vector<1x4x80xf32>
    %57 = vector.shape_cast %56 : vector<1x4x80xf32> to vector<4x80xf32>
    %c17_i32_39 = arith.constant 17 : i32
    %58 = tpu.dynamic_rotate %55 by %c17_i32_39 dim 1 : vector<4x512xf32>, i32 -> vector<4x512xf32>
    %59 = vector.broadcast %9 : vector<1x512xf32> to vector<4x512xf32>
    %60 = arith.mulf %58, %59 : vector<4x512xf32>
    %c0_40 = arith.constant 0 : index
    %c0_41 = arith.constant 0 : index
    %61 = vector.load %arg5[%c0_40, %c0_41] : memref<80x512xf32, #tpu.memory_space<vmem>>, vector<4x512xf32>
    tpu.vector_store %arg5[%c0_40, %c0_41], %60 {strides = array<i32>} : memref<80x512xf32, #tpu.memory_space<vmem>>, vector<4x512xf32>,
    %c16_i32_42 = arith.constant 16 : i32
    %62 = tpu.dynamic_rotate %55 by %c16_i32_42 dim 1 : vector<4x512xf32>, i32 -> vector<4x512xf32>
    %63 = vector.broadcast %10 : vector<1x512xf32> to vector<4x512xf32>
    %64 = arith.mulf %62, %63 : vector<4x512xf32>
    %c8_43 = arith.constant 8 : index
    %c0_44 = arith.constant 0 : index
    %65 = vector.load %arg5[%c8_43, %c0_44] : memref<80x512xf32, #tpu.memory_space<vmem>>, vector<4x512xf32>
    tpu.vector_store %arg5[%c8_43, %c0_44], %64 {strides = array<i32>} : memref<80x512xf32, #tpu.memory_space<vmem>>, vector<4x512xf32>,
    %c15_i32_45 = arith.constant 15 : i32
    %66 = tpu.dynamic_rotate %55 by %c15_i32_45 dim 1 : vector<4x512xf32>, i32 -> vector<4x512xf32>
    %67 = vector.broadcast %11 : vector<1x512xf32> to vector<4x512xf32>
    %68 = arith.mulf %66, %67 : vector<4x512xf32>
    %c16_46 = arith.constant 16 : index
    %c0_47 = arith.constant 0 : index
    %69 = vector.load %arg5[%c16_46, %c0_47] : memref<80x512xf32, #tpu.memory_space<vmem>>, vector<4x512xf32>
    tpu.vector_store %arg5[%c16_46, %c0_47], %68 {strides = array<i32>} : memref<80x512xf32, #tpu.memory_space<vmem>>, vector<4x512xf32>,
    %c1_i32_48 = arith.constant 1 : i32
    %70 = tpu.dynamic_rotate %55 by %c1_i32_48 dim 1 : vector<4x512xf32>, i32 -> vector<4x512xf32>
    %71 = vector.broadcast %12 : vector<1x512xf32> to vector<4x512xf32>
    %72 = arith.mulf %70, %71 : vector<4x512xf32>
    %c24_49 = arith.constant 24 : index
    %c0_50 = arith.constant 0 : index
    %73 = vector.load %arg5[%c24_49, %c0_50] : memref<80x512xf32, #tpu.memory_space<vmem>>, vector<4x512xf32>
    tpu.vector_store %arg5[%c24_49, %c0_50], %72 {strides = array<i32>} : memref<80x512xf32, #tpu.memory_space<vmem>>, vector<4x512xf32>,
    %c32_51 = arith.constant 32 : index
    %c0_52 = arith.constant 0 : index
    %74 = vector.load %arg5[%c32_51, %c0_52] : memref<80x512xf32, #tpu.memory_space<vmem>>, vector<4x512xf32>
    tpu.vector_store %arg5[%c32_51, %c0_52], %55 {strides = array<i32>} : memref<80x512xf32, #tpu.memory_space<vmem>>, vector<4x512xf32>,
    %c511_i32_53 = arith.constant 511 : i32
    %75 = tpu.dynamic_rotate %55 by %c511_i32_53 dim 1 : vector<4x512xf32>, i32 -> vector<4x512xf32>
    %76 = vector.broadcast %13 : vector<1x512xf32> to vector<4x512xf32>
    %77 = arith.mulf %75, %76 : vector<4x512xf32>
    %c40_54 = arith.constant 40 : index
    %c0_55 = arith.constant 0 : index
    %78 = vector.load %arg5[%c40_54, %c0_55] : memref<80x512xf32, #tpu.memory_space<vmem>>, vector<4x512xf32>
    tpu.vector_store %arg5[%c40_54, %c0_55], %77 {strides = array<i32>} : memref<80x512xf32, #tpu.memory_space<vmem>>, vector<4x512xf32>,
    %c497_i32_56 = arith.constant 497 : i32
    %79 = tpu.dynamic_rotate %55 by %c497_i32_56 dim 1 : vector<4x512xf32>, i32 -> vector<4x512xf32>
    %80 = vector.broadcast %14 : vector<1x512xf32> to vector<4x512xf32>
    %81 = arith.mulf %79, %80 : vector<4x512xf32>
    %c48_57 = arith.constant 48 : index
    %c0_58 = arith.constant 0 : index
    %82 = vector.load %arg5[%c48_57, %c0_58] : memref<80x512xf32, #tpu.memory_space<vmem>>, vector<4x512xf32>
    tpu.vector_store %arg5[%c48_57, %c0_58], %81 {strides = array<i32>} : memref<80x512xf32, #tpu.memory_space<vmem>>, vector<4x512xf32>,
    %c496_i32_59 = arith.constant 496 : i32
    %83 = tpu.dynamic_rotate %55 by %c496_i32_59 dim 1 : vector<4x512xf32>, i32 -> vector<4x512xf32>
    %84 = vector.broadcast %15 : vector<1x512xf32> to vector<4x512xf32>
    %85 = arith.mulf %83, %84 : vector<4x512xf32>
    %c56_60 = arith.constant 56 : index
    %c0_61 = arith.constant 0 : index
    %86 = vector.load %arg5[%c56_60, %c0_61] : memref<80x512xf32, #tpu.memory_space<vmem>>, vector<4x512xf32>
    tpu.vector_store %arg5[%c56_60, %c0_61], %85 {strides = array<i32>} : memref<80x512xf32, #tpu.memory_space<vmem>>, vector<4x512xf32>,
    %c495_i32_62 = arith.constant 495 : i32
    %87 = tpu.dynamic_rotate %55 by %c495_i32_62 dim 1 : vector<4x512xf32>, i32 -> vector<4x512xf32>
    %88 = vector.broadcast %16 : vector<1x512xf32> to vector<4x512xf32>
    %89 = arith.mulf %87, %88 : vector<4x512xf32>
    %c64_63 = arith.constant 64 : index
    %c0_64 = arith.constant 0 : index
    %90 = vector.load %arg5[%c64_63, %c0_64] : memref<80x512xf32, #tpu.memory_space<vmem>>, vector<4x512xf32>
    tpu.vector_store %arg5[%c64_63, %c0_64], %89 {strides = array<i32>} : memref<80x512xf32, #tpu.memory_space<vmem>>, vector<4x512xf32>,
    %c0_65 = arith.constant 0 : index
    %c0_66 = arith.constant 0 : index
    %91 = vector.load %arg5[%c0_65, %c0_66] : memref<80x512xf32, #tpu.memory_space<vmem>>, vector<80x512xf32>
    %cst_67 = arith.constant dense<0.000000e+00> : vector<4x512xf32>
    %92 = tpu.matmul %57, %91, %cst_67 {dimension_numbers = #tpu.dot_dimension_numbers<[1], [0], [0], [1], [0, 0, 1, 1], [], []>} : vector<4x80xf32>, vector<80x512xf32>, vector<4x512xf32> -> vector<4x512xf32>
    %93 = arith.negf %92 : vector<4x512xf32>
    %94 = math.exp %93 : vector<4x512xf32>
    %cst_68 = arith.constant 1.000000e+00 : f32
    %95 = vector.broadcast %cst_68 : f32 to vector<4x512xf32>
    %96 = arith.addf %95, %94 : vector<4x512xf32>
    %97 = arith.divf %95, %96 : vector<4x512xf32>
    %98 = vector.extract_strided_slice %97 {offsets = [0, 0], sizes = [4, 256], strides = [1, 1]} : vector<4x512xf32> to vector<4x256xf32>
    %c0_69 = arith.constant 0 : index
    %c0_70 = arith.constant 0 : index
    %c0_71 = arith.constant 0 : index
    %99 = vector.load %arg4[%c0_69, %c0_70, %c0_71] : memref<2x4x256xf32, #tpu.memory_space<vmem>>, vector<1x4x256xf32>
    %100 = vector.shape_cast %99 : vector<1x4x256xf32> to vector<4x256xf32>
    %101 = vector.shape_cast %98 : vector<4x256xf32> to vector<1x4x256xf32>
    tpu.vector_store %arg4[%c0_69, %c0_70, %c0_71], %101 {strides = array<i32>} : memref<2x4x256xf32, #tpu.memory_space<vmem>>, vector<1x4x256xf32>,
    %102 = vector.extract_strided_slice %97 {offsets = [0, 256], sizes = [4, 256], strides = [1, 1]} : vector<4x512xf32> to vector<4x256xf32>
    %c1_72 = arith.constant 1 : index
    %c0_73 = arith.constant 0 : index
    %c0_74 = arith.constant 0 : index
    %103 = vector.load %arg4[%c1_72, %c0_73, %c0_74] : memref<2x4x256xf32, #tpu.memory_space<vmem>>, vector<1x4x256xf32>
    %104 = vector.shape_cast %103 : vector<1x4x256xf32> to vector<4x256xf32>
    %105 = vector.shape_cast %102 : vector<4x256xf32> to vector<1x4x256xf32>
    tpu.vector_store %arg4[%c1_72, %c0_73, %c0_74], %105 {strides = array<i32>} : memref<2x4x256xf32, #tpu.memory_space<vmem>>, vector<1x4x256xf32>,
    return
  }
  func.func @transform_0(%arg0: i32) -> (i32, i32, i32) {
    %c0_i32 = arith.constant 0 : i32
    %c0_i32_0 = arith.constant 0 : i32
    %c0_i32_1 = arith.constant 0 : i32
    %c0_i32_2 = arith.constant 0 : i32
    return %c0_i32, %c0_i32_0, %c0_i32_1 : i32, i32, i32
  }
  func.func @transform_1(%arg0: i32) -> (i32, i32) {
    %c0_i32 = arith.constant 0 : i32
    %c0_i32_0 = arith.constant 0 : i32
    %c0_i32_1 = arith.constant 0 : i32
    return %c0_i32, %c0_i32_0 : i32, i32
  }
  func.func @transform_2(%arg0: i32) -> (i32, i32, i32) {
    %c0_i32 = arith.constant 0 : i32
    %c0_i32_0 = arith.constant 0 : i32
    %c0_i32_1 = arith.constant 0 : i32
    %c0_i32_2 = arith.constant 0 : i32
    return %c0_i32, %c0_i32_0, %c0_i32_1 : i32, i32, i32
  }
  func.func @transform_3(%arg0: i32) -> (i32, i32, i32) {
    %c0_i32 = arith.constant 0 : i32
    %c0_i32_0 = arith.constant 0 : i32
    %c0_i32_1 = arith.constant 0 : i32
    %c0_i32_2 = arith.constant 0 : i32
    return %c0_i32, %c0_i32_0, %c0_i32_1 : i32, i32, i32
  }
}

</mosaic_0001>

<bundles_post_ra>
// kernel: tpu_custom_call.1
= control target key start
LH: loop header
LB: loop body
LE: loop exit
PB: predicated region body
PF: predicated region fallthrough
CT: control target
= control target key end

     0   :  { %8 = vsyncpa [#allocation4], 0  ;;  %s1691_s0 = inlined_call_operand.hbm [shape: f32[2,4,256], index: 0, kind: input, shape index: {}]   ;;  %s1692_s1 = inlined_call_operand.hbm [shape: f32[9,512], index: 1, kind: input, shape index: {}]   ;;  %s1693_s2 = inlined_call_operand.hbm [shape: f32[2,4,80], index: 2, kind: input, shape index: {}]   ;;  %s1694_s3 = inlined_call_operand.hbm [shape: f32[2,4,256], index: 3, kind: output, shape index: {}]  }
   0x1   :  { %9 = vsyncpa [#allocation7], 0 }
   0x2   :  { %10 = vsyncpa [#allocation5], 0  ;;  %s1196_s12 = smov [#allocation6]  }
   0x3   :  { %s28_s13 = sshll.u32 %s1196_s12, 4  ;;  %s29_s13 = int_to_ptr.vmem [resolvable:$true] %s28_s13 }
   0x4   :  { %s1118_s14 = scalar_lea.vmem %s29_s13, 1024  ;;  %p1123_p1 = scmp.lt.s32.totalorder %s29_s13, %s29_s13 }
   0x5   :  { %p1119_p0 = scmp.ne.s32.totalorder %s29_s13, %s1118_s14  ;;  %p1124_p2 = scmp.lt.s32.totalorder %s1118_s14, %s1118_s14 }
   0x7   :  { %p1125_p3 = por %p1124_p2, %p1123_p1 }
   0x9   :  { %p1126_p4 = pnand %p1125_p3, %p1119_p0 }
   0xb   :  { %1129 = shalt.err (!%p1126_p4)
}
   0xc   :  { %s1197_s15 = smov 512   ;;  %s1198_s16 = smov 32  }
   0xd   :  { %34 = dma.hbm_to_vmem [thread:$0]  %s1692_s1, 1024, %s29_s13, [#allocation7], %s1197_s15, %s1197_s15, %s1198_s16  }
   0xe   :  { %s1199_s19 = smov [#allocation3]  }
   0xf   :  { %s16_s20 = sshll.u32 %s1199_s19, 4  ;;  %s17_s20 = int_to_ptr.vmem [resolvable:$true] %s16_s20 }
  0x10   :  { %s1138_s21 = scalar_lea.vmem %s17_s20, 256  ;;  %p1143_p6 = scmp.lt.s32.totalorder %s17_s20, %s17_s20 }
  0x11   :  { %p1139_p5 = scmp.ne.s32.totalorder %s17_s20, %s1138_s21  ;;  %p1144_p7 = scmp.lt.s32.totalorder %s1138_s21, %s1138_s21 }
  0x13   :  { %p1145_p8 = por %p1144_p7, %p1143_p6 }
  0x15   :  { %p1146_p9 = pnand %p1145_p8, %p1139_p5 }
  0x17   :  { %1149 = shalt.err (!%p1146_p9)
}
  0x18   :  { %s1200_s22 = smov 128   ;;  %s1201_s23 = smov 8  }
  0x19   :  { %22 = dma.hbm_to_vmem [thread:$0]  %s1691_s0, 256, %s17_s20, [#allocation4], %s1200_s22, %s1200_s22, %s1201_s23  }
  0x1a   :  { %s1202_s1 = smov [#allocation8]  }
  0x1b   :  { %s40_s26 = sshll.u32 %s1202_s1, 4  ;;  %s41_s26 = int_to_ptr.vmem [resolvable:$true] %s40_s26 }
  0x1c   :  { %s1158_s27 = scalar_lea.vmem %s41_s26, 128  ;;  %p1163_p11 = scmp.lt.s32.totalorder %s41_s26, %s41_s26 }
  0x1d   :  { %p1159_p10 = scmp.ne.s32.totalorder %s41_s26, %s1158_s27  ;;  %p1164_p12 = scmp.lt.s32.totalorder %s1158_s27, %s1158_s27 }
  0x1f   :  { %p1165_p13 = por %p1164_p12, %p1163_p11 }
  0x21   :  { %p1166_p0 = pnand %p1165_p13, %p1159_p10 }
  0x23   :  { %1169 = shalt.err (!%p1166_p0)
}
  0x24   :  { %s1203_s28 = smov 64   ;;  %s1204_s29 = smov 4  }
  0x25   :  { %46 = dma.hbm_to_vmem [thread:$0]  %s1693_s2, 128, %s41_s26, [#allocation7], %s1203_s28, %s1203_s28, %s1204_s29  }
  0x26   :  { %1190 = dma.done.wait [#allocation4], 256  }
  0x27   :  { %1191 = vsyncadd [#allocation4], 4294967040 }
  0x28   :  { %1192 = dma.done.wait [#allocation7], 1152  }
  0x29   :  { %1193 = vsyncadd [#allocation7], 4294966144  ;;  %v105_v0 = vlaneseq  ;;  %v1205_v1 = vmov 0.0   ;;  %v1206_v2 = vmov 1.0   ;;  %v58_v3 = vld [vmem:[#allocation3 + $0x8] sm:$0xff]  ;;  %v56_v4 = vld [vmem:[#allocation3] sm:$0xff] }
  0x2a   :  { %99 = vst [vmem:[#allocation2 + $0x110] sm:$0xff] %v1205_v1  ;;  %100 = vst [vmem:[#allocation2 + $0x118] sm:$0xff] %v1205_v1  ;;  %578 = vmatprep.mubr.f32.mxu0 %v1205_v1  ;;  %649 = vmatprep.mubr.f32.mxu1 %v1205_v1  ;;  %s1207_s0 = smov 111   ;;  %v63_v5 = vcombine.high %v58_v3, %v58_v3  ;;  %v60_v6 = vcombine.high %v56_v4, %v56_v4  ;;  %s1208_s2 = smov 112   ;;  %vm510_vm9 = vcmask 654336  }
  0x2b   :  { %65 = vst [vmem:[#allocation2] sm:$0xff] %v1205_v1  ;;  %66 = vst [vmem:[#allocation2 + $0x8] sm:$0xff] %v1205_v1  ;;  %vm107_vm0 = vcmp.lt.s32.totalorder %v105_v0, 512  ;;  %432 = vrot.lane.b32.xlu1 %v58_v3, %s1207_s0  ;;  %428 = vrot.lane.b32.xlu0 %v56_v4, %s1207_s0  ;;  %s1209_s5 = smov 113   ;;  %s1210_s6 = smov 127   ;;  %v145_v11 = vshrl.u32 %v105_v0, 7 }
  0x2c   :  { %67 = vst [vmem:[#allocation2 + $0x10] sm:$0xff] %v1205_v1  ;;  %68 = vst [vmem:[#allocation2 + $0x18] sm:$0xff] %v1205_v1  ;;  %s1211_s7 = smov 1   ;;  %s1212_s8 = smov 15   ;;  %v1337_v12 = vand.u32 127, %v105_v0 }
  0x2d   :  { %69 = vst [vmem:[#allocation2 + $0x20] sm:$0xff] %v1205_v1  ;;  %70 = vst [vmem:[#allocation2 + $0x28] sm:$0xff] %v1205_v1  ;;  %s1213_s9 = smov 16   ;;  %s1214_s10 = smov 17   ;;  %v1339_v13 = vsub.s32 2, %v145_v11  ;;  %v1341_v14 = vsub.s32 3, %v145_v11 }
  0x2e   :  { %71 = vst [vmem:[#allocation2 + $0x30] sm:$0xff] %v1205_v1  ;;  %72 = vst [vmem:[#allocation2 + $0x38] sm:$0xff] %v1205_v1  ;;  %v126_v15 = vld [vmem:[#allocation6 + $0x20] ss:$8 sm:$0xf]  ;;  %v1343_v18 = vsub.s32 0, %v145_v11 }
  0x2f   :  { %73 = vst [vmem:[#allocation2 + $0x40] sm:$0xff] %v1205_v1  ;;  %74 = vst [vmem:[#allocation2 + $0x48] sm:$0xff] %v1205_v1  ;;  %434 = vrot.lane.b32.xlu1 %v63_v5, %s1207_s0  ;;  %386 = vrot.lane.b32.xlu0 %v56_v4, %s1208_s2  ;;  %vm436_vm1 = vcmp.lt.s32.totalorder %v1337_v12, 111  ;;  %v1347_v19 = vrot.slane %v126_v15, %v1339_v13  ;;  %v1350_v20 = vrot.slane %v126_v15, %v1341_v14  ;;  %v124_v21 = vld [vmem:[#allocation6 + $0x7] ss:$8 sm:$0xf] }
  0x30   :  { %75 = vst [vmem:[#allocation2 + $0x50] sm:$0xff] %v1205_v1  ;;  %76 = vst [vmem:[#allocation2 + $0x58] sm:$0xff] %v1205_v1  ;;  %v1352_v22 = vsub.s32 1, %v145_v11  ;;  %vm394_vm2 = vcmp.lt.s32.totalorder %v1337_v12, 112  ;;  %v1360_v27 = vrot.slane %v124_v21, %v1343_v18  ;;  %v1365_v30 = vrot.slane %v126_v15, %v1343_v18  ;;  %s1215_s11 = smov [#allocation9]  }
  0x31   :  { %77 = vst [vmem:[#allocation2 + $0x60] sm:$0xff] %v1205_v1  ;;  %78 = vst [vmem:[#allocation2 + $0x68] sm:$0xff] %v1205_v1  ;;  %v1371_v34 = vrot.slane %v124_v21, %v1341_v14  ;;  %v1386_v42 = vrot.slane %v124_v21, %v1339_v13  ;;  %v122_v43 = vld [vmem:[#allocation6 + $0x6] ss:$8 sm:$0xf]  ;;  %vm352_vm3 = vcmp.lt.s32.totalorder %v1337_v12, 113 }
  0x32   :  { %79 = vst [vmem:[#allocation2 + $0x70] sm:$0xff] %v1205_v1  ;;  %80 = vst [vmem:[#allocation2 + $0x78] sm:$0xff] %v1205_v1  ;;  %v1368_v31 = vrot.slane %v126_v15, %v1352_v22  ;;  %v1380_v38 = vrot.slane %v124_v21, %v1352_v22  ;;  %v1399_v52 = vrot.slane %v122_v43, %v1343_v18  ;;  %v120_v0 = vld [vmem:[#allocation6 + $0x5] ss:$8 sm:$0xf]  ;;  %vm310_vm4 = vcmp.lt.s32.totalorder %v1337_v12, 127 }
  0x33   :  { %81 = vst [vmem:[#allocation2 + $0x80] sm:$0xff] %v1205_v1  ;;  %82 = vst [vmem:[#allocation2 + $0x88] sm:$0xff] %v1205_v1  ;;  %388 = vrot.lane.b32.xlu1 %v60_v6, %s1208_s2  ;;  %430 = vrot.lane.b32.xlu0 %v60_v6, %s1207_s0  ;;  %v1405_v59 = vrot.slane %v122_v43, %v1341_v14  ;;  %v1408_v60 = vrot.slane %v122_v43, %v1352_v22  ;;  %vm264_vm5 = vcmp.lt.s32.totalorder %v1337_v12, 1  ;;  %s1051_s12 = sshll.u32 %s1215_s11, 4  ;;  %s1052_s12 = int_to_ptr.vmem [resolvable:$true] %s1051_s12 }
  0x34   :  { %83 = vst [vmem:[#allocation2 + $0x90] sm:$0xff] %v1205_v1  ;;  %84 = vst [vmem:[#allocation2 + $0x98] sm:$0xff] %v1205_v1  ;;  %v1411_v61 = vrot.slane %v122_v43, %v1339_v13  ;;  %vm222_vm6 = vcmp.lt.s32.totalorder %v1337_v12, 15  ;;  %vm180_vm7 = vcmp.lt.s32.totalorder %v1337_v12, 16  ;;  %vm138_vm8 = vcmp.lt.s32.totalorder %v1337_v12, 17  ;;  %s1170_s13 = scalar_lea.vmem %s1052_s12, 256  ;;  %p1175_p2 = scmp.lt.s32.totalorder %s1052_s12, %s1052_s12 }
  0x35   :  { %85 = vst [vmem:[#allocation2 + $0xa0] sm:$0xff] %v1205_v1  ;;  %86 = vst [vmem:[#allocation2 + $0xa8] sm:$0xff] %v1205_v1  ;;  %p1171_p1 = scmp.ne.s32.totalorder %s1052_s12, %s1170_s13  ;;  %p1176_p3 = scmp.lt.s32.totalorder %s1170_s13, %s1170_s13 }
  0x36   :  { %87 = vst [vmem:[#allocation2 + $0xb0] sm:$0xff] %v1205_v1  ;;  %88 = vst [vmem:[#allocation2 + $0xb8] sm:$0xff] %v1205_v1 }
  0x37   :  { %89 = vst [vmem:[#allocation2 + $0xc0] sm:$0xff] %v1205_v1  ;;  %90 = vst [vmem:[#allocation2 + $0xc8] sm:$0xff] %v1205_v1  ;;  %392 = vrot.lane.b32.xlu1 %v63_v5, %s1208_s2  ;;  %390 = vrot.lane.b32.xlu0 %v58_v3, %s1208_s2  ;;  %p1177_p4 = por %p1176_p3, %p1175_p2 }
  0x38   :  { %91 = vst [vmem:[#allocation2 + $0xd0] sm:$0xff] %v1205_v1  ;;  %92 = vst [vmem:[#allocation2 + $0xd8] sm:$0xff] %v1205_v1 }
  0x39   :  { %93 = vst [vmem:[#allocation2 + $0xe0] sm:$0xff] %v1205_v1  ;;  %94 = vst [vmem:[#allocation2 + $0xe8] sm:$0xff] %v1205_v1  ;;  %p1178_p5 = pnand %p1177_p4, %p1171_p1 }
  0x3a   :  { %95 = vst [vmem:[#allocation2 + $0xf0] sm:$0xff] %v1205_v1  ;;  %96 = vst [vmem:[#allocation2 + $0xf8] sm:$0xff] %v1205_v1 }
  0x3b   :  { %97 = vst [vmem:[#allocation2 + $0x100] sm:$0xff] %v1205_v1  ;;  %98 = vst [vmem:[#allocation2 + $0x108] sm:$0xff] %v1205_v1  ;;  %346 = vrot.lane.b32.xlu1 %v60_v6, %s1209_s5  ;;  %344 = vrot.lane.b32.xlu0 %v56_v4, %s1209_s5 }
  0x3c   :  { %101 = vst [vmem:[#allocation2 + $0x120] sm:$0xff] %v1205_v1  ;;  %102 = vst [vmem:[#allocation2 + $0x128] sm:$0xff] %v1205_v1 }
  0x3d   :  { %103 = vst [vmem:[#allocation2 + $0x130] sm:$0xff] %v1205_v1  ;;  %104 = vst [vmem:[#allocation2 + $0x138] sm:$0xff] %v1205_v1 }
  0x3e   :  { %110 = vst.msk [vmem:[#allocation2 + $0x120] ss:$8 sm:$0xf] %vm107_vm0, %v1206_v2  ;;  %298 = vst [vmem:[#allocation2 + $0x80] sm:$0xf] %v56_v4 }
  0x3f   :  { %300 = vst [vmem:[#allocation2 + $0x90] sm:$0xf] %v58_v3  ;;  %299 = vst [vmem:[#allocation2 + $0x88] sm:$0xf] %v60_v6  ;;  %350 = vrot.lane.b32.xlu1 %v63_v5, %s1209_s5  ;;  %348 = vrot.lane.b32.xlu0 %v58_v3, %s1209_s5 }
  0x40   :  { %301 = vst [vmem:[#allocation2 + $0x98] sm:$0xf] %v63_v5 }
  0x43   :  { %304 = vrot.lane.b32.xlu1 %v60_v6, %s1210_s6  ;;  %302 = vrot.lane.b32.xlu0 %v56_v4, %s1210_s6 }
  0x45   :  { %v1293_v7 = vld [vmem:[#allocation2 + $0x138] sm:$0xff]  ;;  %v1295_v8 = vld [vmem:[#allocation2 + $0x130] sm:$0xff]  ;;  %v1298_v9 = vld [vmem:[#allocation2 + $0x128] sm:$0xff] }
  0x46   :  { %597 = vmatprep.subr.mxu1 %v1293_v7  ;;  %v1302_v10 = vld [vmem:[#allocation2 + $0x120] sm:$0xff]  ;;  %526 = vmatprep.subr.mxu0 %v1298_v9 }
  0x47   :  { %598 = vmatpush1.msra.mxu1 %v1295_v8  ;;  %527 = vmatpush1.msra.mxu0 %v1302_v10 }
  0x48   :  { %308 = vrot.lane.b32.xlu1 %v63_v5, %s1210_s6  ;;  %306 = vrot.lane.b32.xlu0 %v58_v3, %s1210_s6 }
  0x4c   :  { %258 = vrot.lane.b32.xlu1 %v60_v6, %s1211_s7  ;;  %256 = vrot.lane.b32.xlu0 %v56_v4, %s1211_s7 }
  0x50   :  { %262 = vrot.lane.b32.xlu1 %v63_v5, %s1211_s7  ;;  %260 = vrot.lane.b32.xlu0 %v58_v3, %s1211_s7 }
  0x54   :  { %216 = vrot.lane.b32.xlu1 %v60_v6, %s1212_s8  ;;  %214 = vrot.lane.b32.xlu0 %v56_v4, %s1212_s8 }
  0x58   :  { %220 = vrot.lane.b32.xlu1 %v63_v5, %s1212_s8  ;;  %218 = vrot.lane.b32.xlu0 %v58_v3, %s1212_s8 }
  0x5c   :  { %174 = vrot.lane.b32.xlu1 %v60_v6, %s1213_s9  ;;  %172 = vrot.lane.b32.xlu0 %v56_v4, %s1213_s9 }
  0x60   :  { %178 = vrot.lane.b32.xlu1 %v63_v5, %s1213_s9  ;;  %176 = vrot.lane.b32.xlu0 %v58_v3, %s1213_s9 }
  0x64   :  { %130 = vrot.lane.b32.xlu1 %v60_v6, %s1214_s10  ;;  %128 = vrot.lane.b32.xlu0 %v56_v4, %s1214_s10 }
  0x68   :  { %134 = vrot.lane.b32.xlu1 %v63_v5, %s1214_s10  ;;  %132 = vrot.lane.b32.xlu0 %v58_v3, %s1214_s10 }
  0x9d   :  { %v433_v16 = vpop.permute.xlu1 %432  ;;  %v429_v17 = vpop.permute.xlu0 %428 }
  0xa1   :  { %v435_v23 = vpop.permute.xlu1 %434  ;;  %v387_v24 = vpop.permute.xlu0 %386 }
  0xa2   :  { %v437_v25 = vsel %vm436_vm1, %v433_v16, %v435_v23  ;;  %v440_v26 = vsel %vm436_vm1, %v435_v23, %v429_v17 }
  0xa3   :  { %v464_v28 = vmul.f32 %v1347_v19, %v437_v25  ;;  %v465_v29 = vmul.f32 %v1350_v20, %v440_v26 }
  0xa5   :  { %468 = vst [vmem:[#allocation2 + $0x110] sm:$0xf] %v464_v28  ;;  %469 = vst [vmem:[#allocation2 + $0x118] sm:$0xf] %v465_v29  ;;  %v389_v32 = vpop.permute.xlu1 %388  ;;  %v431_v33 = vpop.permute.xlu0 %430 }
  0xa6   :  { %v397_v35 = vsel %vm394_vm2, %v387_v24, %v389_v32  ;;  %v438_v36 = vsel %vm436_vm1, %v431_v33, %v433_v16  ;;  %v439_v37 = vsel %vm436_vm1, %v429_v17, %v431_v33  ;;  %v1424_v17 = vrot.slane %v120_v0, %v1343_v18 }
  0xa7   :  { %v420_v39 = vmul.f32 %v1360_v27, %v397_v35  ;;  %v462_v40 = vmul.f32 %v1365_v30, %v439_v37  ;;  %v463_v41 = vmul.f32 %v1368_v31, %v438_v36  ;;  %v1430_v33 = vrot.slane %v120_v0, %v1341_v14  ;;  %v118_v37 = vld [vmem:[#allocation6 + $0x3] ss:$8 sm:$0xf] }
  0xa8   :  { %v1433_v35 = vrot.slane %v120_v0, %v1352_v22  ;;  %v1436_v36 = vrot.slane %v120_v0, %v1339_v13  ;;  %v116_v0 = vld [vmem:[#allocation6 + $0x2] ss:$8 sm:$0xf] }
  0xa9   :  { %424 = vst [vmem:[#allocation2 + $0xe0] sm:$0xf] %v420_v39  ;;  %466 = vst [vmem:[#allocation2 + $0x100] sm:$0xf] %v462_v40  ;;  %v393_v44 = vpop.permute.xlu1 %392  ;;  %v391_v45 = vpop.permute.xlu0 %390 }
  0xaa   :  { %467 = vst [vmem:[#allocation2 + $0x108] sm:$0xf] %v463_v41  ;;  %v398_v46 = vsel %vm394_vm2, %v393_v44, %v387_v24  ;;  %v395_v47 = vsel %vm394_vm2, %v391_v45, %v393_v44  ;;  %v396_v48 = vsel %vm394_vm2, %v389_v32, %v391_v45 }
  0xab   :  { %v423_v49 = vmul.f32 %v1371_v34, %v398_v46  ;;  %v421_v50 = vmul.f32 %v1380_v38, %v396_v48  ;;  %v422_v51 = vmul.f32 %v1386_v42, %v395_v47  ;;  %v1449_v48 = vrot.slane %v118_v37, %v1352_v22 }
  0xac   :  { %v505_v53 = vld [vmem:[#allocation2 + $0x118] sm:$0xff]  ;;  %v504_v54 = vld [vmem:[#allocation2 + $0x110] sm:$0xff] }
  0xad   :  { %427 = vst [vmem:[#allocation2 + $0xf8] sm:$0xf] %v423_v49  ;;  %425 = vst [vmem:[#allocation2 + $0xe8] sm:$0xf] %v421_v50  ;;  %599 = vmatprep.subr.mxu1 %v505_v53  ;;  %v347_v55 = vpop.permute.xlu1 %346  ;;  %v345_v56 = vpop.permute.xlu0 %344 }
  0xae   :  { %426 = vst [vmem:[#allocation2 + $0xf0] sm:$0xf] %v422_v51  ;;  %v355_v57 = vsel %vm352_vm3, %v345_v56, %v347_v55  ;;  %600 = vmatpush1.msra.mxu1 %v504_v54 }
  0xaf   :  { %v378_v58 = vmul.f32 %v1399_v52, %v355_v57 }
  0xb0   :  { %v502_v63 = vld [vmem:[#allocation2 + $0x100] sm:$0xff] }
  0xb1   :  { %v503_v62 = vld [vmem:[#allocation2 + $0x108] sm:$0xff]  ;;  %382 = vst [vmem:[#allocation2 + $0xc0] sm:$0xf] %v378_v58  ;;  %v351_v2 = vpop.permute.xlu1 %350  ;;  %v349_v3 = vpop.permute.xlu0 %348  ;;  %v498_v28 = vld [vmem:[#allocation2 + $0xe0] sm:$0xff]  ;;  %v1455_v58 = vrot.slane %v118_v37, %v1343_v18 }
  0xb2   :  { %528 = vmatprep.subr.mxu0 %v503_v62  ;;  %v356_v4 = vsel %vm352_vm3, %v351_v2, %v345_v56  ;;  %v353_v5 = vsel %vm352_vm3, %v349_v3, %v351_v2  ;;  %v354_v6 = vsel %vm352_vm3, %v347_v55, %v349_v3  ;;  %v1458_v62 = vrot.slane %v118_v37, %v1339_v13 }
  0xb3   :  { %529 = vmatpush1.msra.mxu0 %v502_v63  ;;  %v381_v11 = vmul.f32 %v1405_v59, %v356_v4  ;;  %v379_v15 = vmul.f32 %v1408_v60, %v354_v6  ;;  %v380_v16 = vmul.f32 %v1411_v61, %v353_v5  ;;  %v1461_v63 = vrot.slane %v118_v37, %v1341_v14 }
  0xb4   :  { %v501_v21 = vld [vmem:[#allocation2 + $0xf8] sm:$0xff]  ;;  %v499_v23 = vld [vmem:[#allocation2 + $0xe8] sm:$0xff] }
  0xb5   :  { %v500_v24 = vld [vmem:[#allocation2 + $0xf0] sm:$0xff]  ;;  %385 = vst [vmem:[#allocation2 + $0xd8] sm:$0xf] %v381_v11  ;;  %383 = vst [vmem:[#allocation2 + $0xc8] sm:$0xf] %v379_v15  ;;  %601 = vmatprep.subr.mxu1 %v501_v21  ;;  %v305_v25 = vpop.permute.xlu1 %304  ;;  %530 = vmatprep.subr.mxu0 %v499_v23  ;;  %v303_v26 = vpop.permute.xlu0 %302  ;;  %v1474_v21 = vrot.slane %v116_v0, %v1352_v22  ;;  %v487_v23 = vld [vmem:[#allocation2 + $0x88] sm:$0xff] }
  0xb6   :  { %384 = vst [vmem:[#allocation2 + $0xd0] sm:$0xf] %v380_v16  ;;  %v313_v29 = vsel %vm310_vm4, %v303_v26, %v305_v25  ;;  %531 = vmatpush1.msra.mxu0 %v498_v28  ;;  %602 = vmatpush1.msra.mxu1 %v500_v24  ;;  %v489_v24 = vld [vmem:[#allocation2 + $0x98] sm:$0xff] }
  0xb7   :  { %v336_v32 = vmul.f32 %v1424_v17, %v313_v29 }
  0xb8   :  { %v494_v55 = vld [vmem:[#allocation2 + $0xc0] sm:$0xff] }
  0xb9   :  { %340 = vst [vmem:[#allocation2 + $0xa0] sm:$0xf] %v336_v32 }
  0xba   :  { %v309_v39 = vpop.permute.xlu1 %308  ;;  %v307_v40 = vpop.permute.xlu0 %306 }
  0xbb   :  { %v314_v41 = vsel %vm310_vm4, %v309_v39, %v303_v26  ;;  %v311_v43 = vsel %vm310_vm4, %v307_v40, %v309_v39  ;;  %v312_v44 = vsel %vm310_vm4, %v305_v25, %v307_v40  ;;  %v486_v39 = vld [vmem:[#allocation2 + $0x80] sm:$0xff]  ;;  %v488_v40 = vld [vmem:[#allocation2 + $0x90] sm:$0xff] }
  0xbc   :  { %v339_v45 = vmul.f32 %v1430_v33, %v314_v41  ;;  %v337_v46 = vmul.f32 %v1433_v35, %v312_v44  ;;  %v338_v47 = vmul.f32 %v1436_v36, %v311_v43  ;;  %v495_v49 = vld [vmem:[#allocation2 + $0xc8] sm:$0xff]  ;;  %v497_v50 = vld [vmem:[#allocation2 + $0xd8] sm:$0xff]  ;;  %v1479_v43 = vrot.slane %v116_v0, %v1343_v18 }
  0xbd   :  { %v496_v51 = vld [vmem:[#allocation2 + $0xd0] sm:$0xff]  ;;  %532 = vmatprep.subr.mxu0 %v495_v49  ;;  %603 = vmatprep.subr.mxu1 %v497_v50 }
  0xbe   :  { %343 = vst [vmem:[#allocation2 + $0xb8] sm:$0xf] %v339_v45  ;;  %341 = vst [vmem:[#allocation2 + $0xa8] sm:$0xf] %v337_v46  ;;  %v259_v53 = vpop.permute.xlu1 %258  ;;  %v257_v54 = vpop.permute.xlu0 %256  ;;  %533 = vmatpush1.msra.mxu0 %v494_v55  ;;  %604 = vmatpush1.msra.mxu1 %v496_v51  ;;  %v1483_v45 = vrot.slane %v116_v0, %v1339_v13  ;;  %v1486_v46 = vrot.slane %v116_v0, %v1341_v14 }
  0xbf   :  { %342 = vst [vmem:[#allocation2 + $0xb0] sm:$0xf] %v338_v47  ;;  %v267_v56 = vsel %vm264_vm5, %v257_v54, %v259_v53  ;;  %v114_v49 = vld [vmem:[#allocation6 + $0x1] ss:$8 sm:$0xf] }
  0xc0   :  { %v291_v57 = vmul.f32 %v1449_v48, %v267_v56  ;;  %v490_v37 = vld [vmem:[#allocation2 + $0xa0] sm:$0xff] }
  0xc2   :  { %295 = vst [vmem:[#allocation2 + $0x68] sm:$0xf] %v291_v57  ;;  %v263_v2 = vpop.permute.xlu1 %262  ;;  %v261_v3 = vpop.permute.xlu0 %260 }
  0xc3   :  { %v268_v4 = vsel %vm264_vm5, %v263_v2, %v257_v54  ;;  %v265_v5 = vsel %vm264_vm5, %v261_v3, %v263_v2  ;;  %v266_v6 = vsel %vm264_vm5, %v259_v53, %v261_v3  ;;  %v1499_v2 = vrot.slane %v114_v49, %v1352_v22 }
  0xc4   :  { %v290_v11 = vmul.f32 %v1455_v58, %v268_v4  ;;  %v292_v15 = vmul.f32 %v1458_v62, %v266_v6  ;;  %v293_v16 = vmul.f32 %v1461_v63, %v265_v5 }
  0xc5   :  { %v491_v25 = vld [vmem:[#allocation2 + $0xa8] sm:$0xff]  ;;  %v493_v26 = vld [vmem:[#allocation2 + $0xb8] sm:$0xff] }
  0xc6   :  { %v492_v28 = vld [vmem:[#allocation2 + $0xb0] sm:$0xff]  ;;  %294 = vst [vmem:[#allocation2 + $0x60] sm:$0xf] %v290_v11  ;;  %296 = vst [vmem:[#allocation2 + $0x70] sm:$0xf] %v292_v15  ;;  %v217_v29 = vpop.permute.xlu1 %216  ;;  %534 = vmatprep.subr.mxu0 %v491_v25  ;;  %605 = vmatprep.subr.mxu1 %v493_v26  ;;  %v215_v32 = vpop.permute.xlu0 %214  ;;  %v1511_v25 = vrot.slane %v114_v49, %v1341_v14 }
  0xc7   :  { %297 = vst [vmem:[#allocation2 + $0x78] sm:$0xf] %v293_v16  ;;  %v225_v41 = vsel %vm222_vm6, %v215_v32, %v217_v29  ;;  %535 = vmatpush1.msra.mxu0 %v490_v37  ;;  %606 = vmatpush1.msra.mxu1 %v492_v28  ;;  %v112_v28 = vld [vmem:[#allocation6] ss:$8 sm:$0xf] }
  0xc8   :  { %v249_v44 = vmul.f32 %v1474_v21, %v225_v41  ;;  %536 = vmatprep.subr.mxu0 %v487_v23  ;;  %607 = vmatprep.subr.mxu1 %v489_v24  ;;  %v1505_v23 = vrot.slane %v114_v49, %v1343_v18  ;;  %v1508_v24 = vrot.slane %v114_v49, %v1339_v13 }
  0xc9   :  { %537 = vmatpush1.msra.mxu0 %v486_v39  ;;  %v483_v47 = vld [vmem:[#allocation2 + $0x68] sm:$0xff]  ;;  %608 = vmatpush1.msra.mxu1 %v488_v40  ;;  %v1524_v49 = vrot.slane %v112_v28, %v1352_v22  ;;  %v1533_v22 = vrot.slane %v112_v28, %v1339_v13 }
  0xca   :  { %253 = vst [vmem:[#allocation2 + $0x48] sm:$0xf] %v249_v44  ;;  %v221_v50 = vpop.permute.xlu1 %220  ;;  %v219_v51 = vpop.permute.xlu0 %218  ;;  %538 = vmatprep.subr.mxu0 %v483_v47 }
  0xcb   :  { %v226_v53 = vsel %vm222_vm6, %v221_v50, %v215_v32  ;;  %v223_v54 = vsel %vm222_vm6, %v219_v51, %v221_v50  ;;  %v224_v55 = vsel %vm222_vm6, %v217_v29, %v219_v51 }
  0xcc   :  { %v248_v56 = vmul.f32 %v1479_v43, %v226_v53  ;;  %v250_v57 = vmul.f32 %v1483_v45, %v224_v55  ;;  %v251_v0 = vmul.f32 %v1486_v46, %v223_v54 }
  0xcd   :  { %v482_v4 = vld [vmem:[#allocation2 + $0x60] sm:$0xff]  ;;  %v484_v5 = vld [vmem:[#allocation2 + $0x70] sm:$0xff] }
  0xce   :  { %v485_v3 = vld [vmem:[#allocation2 + $0x78] sm:$0xff]  ;;  %252 = vst [vmem:[#allocation2 + $0x40] sm:$0xf] %v248_v56  ;;  %254 = vst [vmem:[#allocation2 + $0x50] sm:$0xf] %v250_v57  ;;  %v175_v6 = vpop.permute.xlu1 %174  ;;  %v173_v11 = vpop.permute.xlu0 %172  ;;  %539 = vmatpush1.msra.mxu0 %v482_v4 }
  0xcf   :  { %255 = vst [vmem:[#allocation2 + $0x58] sm:$0xf] %v251_v0  ;;  %609 = vmatprep.subr.mxu1 %v485_v3  ;;  %v183_v15 = vsel %vm180_vm7, %v173_v11, %v175_v6  ;;  %v1530_v0 = vrot.slane %v112_v28, %v1343_v18  ;;  %v1536_v3 = vrot.slane %v112_v28, %v1341_v14 }
  0xd0   :  { %610 = vmatpush1.msra.mxu1 %v484_v5  ;;  %v207_v16 = vmul.f32 %v1499_v2, %v183_v15 }
  0xd1   :  { %v479_v26 = vld [vmem:[#allocation2 + $0x48] sm:$0xff] }
  0xd2   :  { %211 = vst [vmem:[#allocation2 + $0x28] sm:$0xf] %v207_v16  ;;  %v179_v29 = vpop.permute.xlu1 %178  ;;  %v177_v32 = vpop.permute.xlu0 %176  ;;  %540 = vmatprep.subr.mxu0 %v479_v26 }
  0xd3   :  { %v184_v37 = vsel %vm180_vm7, %v179_v29, %v173_v11  ;;  %v181_v39 = vsel %vm180_vm7, %v177_v32, %v179_v29  ;;  %v182_v40 = vsel %vm180_vm7, %v175_v6, %v177_v32 }
  0xd4   :  { %v206_v41 = vmul.f32 %v1505_v23, %v184_v37  ;;  %v208_v44 = vmul.f32 %v1508_v24, %v182_v40  ;;  %v209_v47 = vmul.f32 %v1511_v25, %v181_v39  ;;  %v127_v37 = vld [vmem:[#allocation8] sm:$0xf] }
  0xd5   :  { %v478_v51 = vld [vmem:[#allocation2 + $0x40] sm:$0xff]  ;;  %v480_v53 = vld [vmem:[#allocation2 + $0x50] sm:$0xff] }
  0xd6   :  { %v481_v50 = vld [vmem:[#allocation2 + $0x58] sm:$0xff]  ;;  %210 = vst [vmem:[#allocation2 + $0x20] sm:$0xf] %v206_v41  ;;  %212 = vst [vmem:[#allocation2 + $0x30] sm:$0xf] %v208_v44  ;;  %v131_v54 = vpop.permute.xlu1 %130  ;;  %v129_v55 = vpop.permute.xlu0 %128  ;;  %541 = vmatpush1.msra.mxu0 %v478_v51 }
  0xd7   :  { %213 = vst [vmem:[#allocation2 + $0x38] sm:$0xf] %v209_v47  ;;  %611 = vmatprep.subr.mxu1 %v481_v50  ;;  %v141_v56 = vsel %vm138_vm8, %v129_v55, %v131_v54 }
  0xd8   :  { %612 = vmatpush1.msra.mxu1 %v480_v53  ;;  %v165_v57 = vmul.f32 %v1524_v49, %v141_v56 }
  0xd9   :  { %v475_v4 = vld [vmem:[#allocation2 + $0x28] sm:$0xff] }
  0xda   :  { %169 = vst [vmem:[#allocation2 + $0x8] sm:$0xf] %v165_v57  ;;  %v135_v5 = vpop.permute.xlu1 %134  ;;  %v133_v6 = vpop.permute.xlu0 %132  ;;  %542 = vmatprep.subr.mxu0 %v475_v4 }
  0xdb   :  { %v142_v11 = vsel %vm138_vm8, %v135_v5, %v129_v55  ;;  %v139_v15 = vsel %vm138_vm8, %v133_v6, %v135_v5  ;;  %v140_v18 = vsel %vm138_vm8, %v131_v54, %v133_v6 }
  0xdc   :  { %v164_v13 = vmul.f32 %v1530_v0, %v142_v11  ;;  %v166_v16 = vmul.f32 %v1533_v22, %v140_v18  ;;  %v167_v14 = vmul.f32 %v1536_v3, %v139_v15 }
  0xdd   :  { %v474_v26 = vld [vmem:[#allocation2 + $0x20] sm:$0xff]  ;;  %v476_v29 = vld [vmem:[#allocation2 + $0x30] sm:$0xff] }
  0xde   :  { %v477_v28 = vld [vmem:[#allocation2 + $0x38] sm:$0xff]  ;;  %168 = vst [vmem:[#allocation2] sm:$0xf] %v164_v13  ;;  %170 = vst [vmem:[#allocation2 + $0x10] sm:$0xf] %v166_v16  ;;  %543 = vmatpush1.msra.mxu0 %v474_v26 }
  0xdf   :  { %171 = vst [vmem:[#allocation2 + $0x18] sm:$0xf] %v167_v14  ;;  %613 = vmatprep.subr.mxu1 %v477_v28 }
  0xe0   :  { %614 = vmatpush1.msra.mxu1 %v476_v29 }
  0xe1   :  { %v471_v32 = vld [vmem:[#allocation2 + $0x8] sm:$0xff] }
  0xe2   :  { %544 = vmatprep.subr.mxu0 %v471_v32 }
  0xe5   :  { %v470_v39 = vld [vmem:[#allocation2] sm:$0xff]  ;;  %v472_v41 = vld [vmem:[#allocation2 + $0x10] sm:$0xff] }
  0xe6   :  { %v473_v40 = vld [vmem:[#allocation2 + $0x18] sm:$0xff]  ;;  %545 = vmatpush1.msra.mxu0 %v470_v39 }
  0xe7   :  { %615 = vmatprep.subr.mxu1 %v473_v40  ;;  %1064 = vmatmul.mubr.msk.f32.vlgmr.msra.gmra.mxu0 %vm510_vm9, %v127_v37 }
  0xe8   :  { %616 = vmatpush1.msra.mxu1 %v472_v41  ;;  %881 = vmatprep.subr.mxu0 %v1298_v9 }
  0xe9   :  { %1065 = vmatmul.mubr.msk.f32.vlgmr.msra.gmra.mxu1 %vm510_vm9, %v127_v37  ;;  %882 = vmatpush1.msra.mxu0 %v1302_v10 }
  0xea   :  { %952 = vmatprep.subr.mxu1 %v1293_v7  ;;  %933 = vmatprep.mubr.f32.mxu0 %v1205_v1 }
  0xeb   :  { %953 = vmatpush1.msra.mxu1 %v1295_v8  ;;  %1004 = vmatprep.mubr.f32.mxu1 %v1205_v1 }
 0x1a7   :  { %v580_v44 = vpop.f32.mrf.mxu0 }
 0x1a8   :  { %v656_v47 = vmax.f32 %v580_v44, 0.0 }
 0x1a9   :  { %v651_v50 = vpop.f32.mrf.mxu1  ;;  %v582_v51 = vpop.f32.mrf.mxu0 }
 0x1aa   :  { %v658_v53 = vmax.f32 %v651_v50, 0.0  ;;  %742 = vst [vmem:[#allocation2 + $0x80] sm:$0xf] %v656_v47  ;;  %v657_v54 = vmax.f32 %v582_v51, 0.0  ;;  %806 = vrot.lane.b32.xlu0 %v656_v47, %s1207_s0 }
 0x1ab   :  { %v653_v9 = vpop.f32.mrf.mxu1 }
 0x1ac   :  { %744 = vst [vmem:[#allocation2 + $0x90] sm:$0xf] %v658_v53  ;;  %v659_v10 = vmax.f32 %v653_v9, 0.0  ;;  %743 = vst [vmem:[#allocation2 + $0x88] sm:$0xf] %v657_v54  ;;  %808 = vrot.lane.b32.xlu1 %v657_v54, %s1207_s0 }
 0x1ae   :  { %745 = vst [vmem:[#allocation2 + $0x98] sm:$0xf] %v659_v10  ;;  %810 = vrot.lane.b32.xlu0 %v658_v53, %s1207_s0 }
 0x1b0   :  { %812 = vrot.lane.b32.xlu1 %v659_v10, %s1207_s0 }
 0x1b2   :  { %786 = vrot.lane.b32.xlu0 %v656_v47, %s1208_s2 }
 0x1b4   :  { %788 = vrot.lane.b32.xlu1 %v657_v54, %s1208_s2 }
 0x1b6   :  { %790 = vrot.lane.b32.xlu0 %v658_v53, %s1208_s2 }
 0x1b8   :  { %792 = vrot.lane.b32.xlu1 %v659_v10, %s1208_s2 }
 0x1ba   :  { %766 = vrot.lane.b32.xlu0 %v656_v47, %s1209_s5 }
 0x1bc   :  { %768 = vrot.lane.b32.xlu1 %v657_v54, %s1209_s5 }
 0x1be   :  { %770 = vrot.lane.b32.xlu0 %v658_v53, %s1209_s5 }
 0x1c0   :  { %772 = vrot.lane.b32.xlu1 %v659_v10, %s1209_s5 }
 0x1c2   :  { %746 = vrot.lane.b32.xlu0 %v656_v47, %s1210_s6 }
 0x1c4   :  { %748 = vrot.lane.b32.xlu1 %v657_v54, %s1210_s6 }
 0x1c6   :  { %750 = vrot.lane.b32.xlu0 %v658_v53, %s1210_s6 }
 0x1c8   :  { %752 = vrot.lane.b32.xlu1 %v659_v10, %s1210_s6 }
 0x1ca   :  { %722 = vrot.lane.b32.xlu0 %v656_v47, %s1211_s7 }
 0x1cc   :  { %724 = vrot.lane.b32.xlu1 %v657_v54, %s1211_s7 }
 0x1ce   :  { %726 = vrot.lane.b32.xlu0 %v658_v53, %s1211_s7 }
 0x1d0   :  { %728 = vrot.lane.b32.xlu1 %v659_v10, %s1211_s7 }
 0x1d2   :  { %702 = vrot.lane.b32.xlu0 %v656_v47, %s1212_s8 }
 0x1d4   :  { %704 = vrot.lane.b32.xlu1 %v657_v54, %s1212_s8 }
 0x1d6   :  { %706 = vrot.lane.b32.xlu0 %v658_v53, %s1212_s8 }
 0x1d8   :  { %708 = vrot.lane.b32.xlu1 %v659_v10, %s1212_s8 }
 0x1da   :  { %682 = vrot.lane.b32.xlu0 %v656_v47, %s1213_s9 }
 0x1dc   :  { %684 = vrot.lane.b32.xlu1 %v657_v54, %s1213_s9 }
 0x1de   :  { %686 = vrot.lane.b32.xlu0 %v658_v53, %s1213_s9 }
 0x1e0   :  { %688 = vrot.lane.b32.xlu1 %v659_v10, %s1213_s9 }
 0x1e2   :  { %662 = vrot.lane.b32.xlu0 %v656_v47, %s1214_s10 }
 0x1e4   :  { %664 = vrot.lane.b32.xlu1 %v657_v54, %s1214_s10 }
 0x1e6   :  { %666 = vrot.lane.b32.xlu0 %v658_v53, %s1214_s10 }
 0x1e8   :  { %668 = vrot.lane.b32.xlu1 %v659_v10, %s1214_s10 }
 0x21c   :  { %v807_v1 = vpop.permute.xlu0 %806 }
 0x21e   :  { %v809_v7 = vpop.permute.xlu1 %808 }
 0x21f   :  { %v816_v8 = vsel %vm436_vm1, %v807_v1, %v809_v7 }
 0x220   :  { %v818_v55 = vmul.f32 %v816_v8, %v1365_v30  ;;  %v811_v56 = vpop.permute.xlu0 %810 }
 0x221   :  { %v815_v57 = vsel %vm436_vm1, %v809_v7, %v811_v56 }
 0x222   :  { %822 = vst [vmem:[#allocation2 + $0x100] sm:$0xf] %v818_v55  ;;  %v819_v4 = vmul.f32 %v815_v57, %v1368_v31  ;;  %v813_v5 = vpop.permute.xlu1 %812 }
 0x223   :  { %v814_v6 = vsel %vm436_vm1, %v811_v56, %v813_v5  ;;  %v817_v11 = vsel %vm436_vm1, %v813_v5, %v807_v1 }
 0x224   :  { %823 = vst [vmem:[#allocation2 + $0x108] sm:$0xf] %v819_v4  ;;  %v820_v15 = vmul.f32 %v814_v6, %v1347_v19  ;;  %v821_v18 = vmul.f32 %v817_v11, %v1350_v20  ;;  %v787_v30 = vpop.permute.xlu0 %786 }
 0x226   :  { %824 = vst [vmem:[#allocation2 + $0x110] sm:$0xf] %v820_v15  ;;  %825 = vst [vmem:[#allocation2 + $0x118] sm:$0xf] %v821_v18  ;;  %v789_v13 = vpop.permute.xlu1 %788 }
 0x227   :  { %v796_v16 = vsel %vm394_vm2, %v787_v30, %v789_v13 }
 0x228   :  { %v798_v31 = vmul.f32 %v796_v16, %v1360_v27  ;;  %v791_v14 = vpop.permute.xlu0 %790 }
 0x229   :  { %v795_v26 = vsel %vm394_vm2, %v789_v13, %v791_v14  ;;  %v858_v40 = vld [vmem:[#allocation2 + $0x100] sm:$0xff] }
 0x22a   :  { %802 = vst [vmem:[#allocation2 + $0xe0] sm:$0xf] %v798_v31  ;;  %v799_v28 = vmul.f32 %v795_v26, %v1380_v38  ;;  %v793_v29 = vpop.permute.xlu1 %792 }
 0x22b   :  { %v794_v19 = vsel %vm394_vm2, %v791_v14, %v793_v29  ;;  %v797_v20 = vsel %vm394_vm2, %v793_v29, %v787_v30  ;;  %v859_v32 = vld [vmem:[#allocation2 + $0x108] sm:$0xff] }
 0x22c   :  { %803 = vst [vmem:[#allocation2 + $0xe8] sm:$0xf] %v799_v28  ;;  %v800_v37 = vmul.f32 %v794_v19, %v1386_v42  ;;  %v801_v27 = vmul.f32 %v797_v20, %v1371_v34  ;;  %v767_v39 = vpop.permute.xlu0 %766  ;;  %883 = vmatprep.subr.mxu0 %v859_v32 }
 0x22d   :  { %884 = vmatpush1.msra.mxu0 %v858_v40  ;;  %v861_v41 = vld [vmem:[#allocation2 + $0x118] sm:$0xff]  ;;  %v860_v44 = vld [vmem:[#allocation2 + $0x110] sm:$0xff] }
 0x22e   :  { %804 = vst [vmem:[#allocation2 + $0xf0] sm:$0xf] %v800_v37  ;;  %805 = vst [vmem:[#allocation2 + $0xf8] sm:$0xf] %v801_v27  ;;  %954 = vmatprep.subr.mxu1 %v861_v41  ;;  %v769_v38 = vpop.permute.xlu1 %768 }
 0x22f   :  { %v776_v47 = vsel %vm352_vm3, %v767_v39, %v769_v38  ;;  %955 = vmatpush1.msra.mxu1 %v860_v44  ;;  %v843_v44 = vld [vmem:[#allocation2 + $0x88] sm:$0xff] }
 0x230   :  { %v778_v50 = vmul.f32 %v776_v47, %v1399_v52  ;;  %v771_v51 = vpop.permute.xlu0 %770  ;;  %v842_v47 = vld [vmem:[#allocation2 + $0x80] sm:$0xff] }
 0x231   :  { %v775_v34 = vsel %vm352_vm3, %v769_v38, %v771_v51  ;;  %v854_v8 = vld [vmem:[#allocation2 + $0xe0] sm:$0xff] }
 0x232   :  { %782 = vst [vmem:[#allocation2 + $0xc0] sm:$0xf] %v778_v50  ;;  %v779_v42 = vmul.f32 %v775_v34, %v1408_v60  ;;  %v773_v53 = vpop.permute.xlu1 %772  ;;  %v844_v34 = vld [vmem:[#allocation2 + $0x90] sm:$0xff] }
 0x233   :  { %v774_v54 = vsel %vm352_vm3, %v771_v51, %v773_v53  ;;  %v777_v9 = vsel %vm352_vm3, %v773_v53, %v767_v39  ;;  %v855_v10 = vld [vmem:[#allocation2 + $0xe8] sm:$0xff] }
 0x234   :  { %783 = vst [vmem:[#allocation2 + $0xc8] sm:$0xf] %v779_v42  ;;  %v780_v1 = vmul.f32 %v774_v54, %v1411_v61  ;;  %v781_v52 = vmul.f32 %v777_v9, %v1405_v59  ;;  %v747_v7 = vpop.permute.xlu0 %746  ;;  %885 = vmatprep.subr.mxu0 %v855_v10 }
 0x235   :  { %886 = vmatpush1.msra.mxu0 %v854_v8  ;;  %v857_v55 = vld [vmem:[#allocation2 + $0xf8] sm:$0xff]  ;;  %v856_v56 = vld [vmem:[#allocation2 + $0xf0] sm:$0xff] }
 0x236   :  { %784 = vst [vmem:[#allocation2 + $0xd0] sm:$0xf] %v780_v1  ;;  %785 = vst [vmem:[#allocation2 + $0xd8] sm:$0xf] %v781_v52  ;;  %956 = vmatprep.subr.mxu1 %v857_v55  ;;  %v749_v60 = vpop.permute.xlu1 %748 }
 0x237   :  { %v756_v57 = vsel %vm310_vm4, %v747_v7, %v749_v60  ;;  %957 = vmatpush1.msra.mxu1 %v856_v56 }
 0x238   :  { %v758_v4 = vmul.f32 %v756_v57, %v1424_v17  ;;  %v751_v5 = vpop.permute.xlu0 %750 }
 0x239   :  { %v755_v59 = vsel %vm310_vm4, %v749_v60, %v751_v5  ;;  %v850_v16 = vld [vmem:[#allocation2 + $0xc0] sm:$0xff] }
 0x23a   :  { %762 = vst [vmem:[#allocation2 + $0xa0] sm:$0xf] %v758_v4  ;;  %v759_v61 = vmul.f32 %v755_v59, %v1433_v35  ;;  %v753_v6 = vpop.permute.xlu1 %752 }
 0x23b   :  { %v754_v11 = vsel %vm310_vm4, %v751_v5, %v753_v6  ;;  %v757_v15 = vsel %vm310_vm4, %v753_v6, %v747_v7  ;;  %v851_v18 = vld [vmem:[#allocation2 + $0xc8] sm:$0xff] }
 0x23c   :  { %763 = vst [vmem:[#allocation2 + $0xa8] sm:$0xf] %v759_v61  ;;  %v760_v30 = vmul.f32 %v754_v11, %v1436_v36  ;;  %v761_v17 = vmul.f32 %v757_v15, %v1430_v33  ;;  %v723_v13 = vpop.permute.xlu0 %722  ;;  %887 = vmatprep.subr.mxu0 %v851_v18 }
 0x23d   :  { %888 = vmatpush1.msra.mxu0 %v850_v16  ;;  %v853_v31 = vld [vmem:[#allocation2 + $0xd8] sm:$0xff]  ;;  %v852_v14 = vld [vmem:[#allocation2 + $0xd0] sm:$0xff] }
 0x23e   :  { %764 = vst [vmem:[#allocation2 + $0xb0] sm:$0xf] %v760_v30  ;;  %765 = vst [vmem:[#allocation2 + $0xb8] sm:$0xf] %v761_v17  ;;  %958 = vmatprep.subr.mxu1 %v853_v31  ;;  %v725_v35 = vpop.permute.xlu1 %724 }
 0x23f   :  { %v732_v26 = vsel %vm264_vm5, %v723_v13, %v725_v35  ;;  %959 = vmatpush1.msra.mxu1 %v852_v14 }
 0x240   :  { %v735_v28 = vmul.f32 %v732_v26, %v1449_v48  ;;  %v727_v29 = vpop.permute.xlu0 %726 }
 0x241   :  { %v731_v33 = vsel %vm264_vm5, %v725_v35, %v727_v29  ;;  %v846_v40 = vld [vmem:[#allocation2 + $0xa0] sm:$0xff] }
 0x242   :  { %739 = vst [vmem:[#allocation2 + $0x68] sm:$0xf] %v735_v28  ;;  %v736_v36 = vmul.f32 %v731_v33, %v1458_v62  ;;  %v729_v19 = vpop.permute.xlu1 %728 }
 0x243   :  { %v730_v20 = vsel %vm264_vm5, %v727_v29, %v729_v19  ;;  %v733_v32 = vsel %vm264_vm5, %v729_v19, %v723_v13  ;;  %v847_v37 = vld [vmem:[#allocation2 + $0xa8] sm:$0xff] }
 0x244   :  { %740 = vst [vmem:[#allocation2 + $0x70] sm:$0xf] %v736_v36  ;;  %v734_v27 = vmul.f32 %v733_v32, %v1455_v58  ;;  %v737_v48 = vmul.f32 %v730_v20, %v1461_v63  ;;  %v703_v39 = vpop.permute.xlu0 %702  ;;  %889 = vmatprep.subr.mxu0 %v847_v37  ;;  %v845_v58 = vld [vmem:[#allocation2 + $0x98] sm:$0xff]  ;;  %v661_v20 = vld [vmem:[#allocation8 + $0x4] sm:$0xf] }
 0x245   :  { %890 = vmatpush1.msra.mxu0 %v846_v40  ;;  %v849_v41 = vld [vmem:[#allocation2 + $0xb8] sm:$0xff]  ;;  %v848_v62 = vld [vmem:[#allocation2 + $0xb0] sm:$0xff] }
 0x246   :  { %738 = vst [vmem:[#allocation2 + $0x60] sm:$0xf] %v734_v27  ;;  %741 = vst [vmem:[#allocation2 + $0x78] sm:$0xf] %v737_v48  ;;  %960 = vmatprep.subr.mxu1 %v849_v41  ;;  %v705_v38 = vpop.permute.xlu1 %704  ;;  %891 = vmatprep.subr.mxu0 %v843_v44 }
 0x247   :  { %v712_v50 = vsel %vm222_vm6, %v703_v39, %v705_v38  ;;  %892 = vmatpush1.msra.mxu0 %v842_v47  ;;  %961 = vmatpush1.msra.mxu1 %v848_v62 }
 0x248   :  { %v715_v63 = vmul.f32 %v712_v50, %v1474_v21  ;;  %v707_v51 = vpop.permute.xlu0 %706  ;;  %962 = vmatprep.subr.mxu1 %v845_v58 }
 0x249   :  { %v711_v42 = vsel %vm222_vm6, %v705_v38, %v707_v51  ;;  %963 = vmatpush1.msra.mxu1 %v844_v34  ;;  %v839_v53 = vld [vmem:[#allocation2 + $0x68] sm:$0xff] }
 0x24a   :  { %719 = vst [vmem:[#allocation2 + $0x48] sm:$0xf] %v715_v63  ;;  %v716_v54 = vmul.f32 %v711_v42, %v1483_v45  ;;  %v709_v9 = vpop.permute.xlu1 %708  ;;  %893 = vmatprep.subr.mxu0 %v839_v53 }
 0x24b   :  { %v710_v10 = vsel %vm222_vm6, %v707_v51, %v709_v9  ;;  %v713_v1 = vsel %vm222_vm6, %v709_v9, %v703_v39  ;;  %v840_v56 = vld [vmem:[#allocation2 + $0x70] sm:$0xff] }
 0x24c   :  { %720 = vst [vmem:[#allocation2 + $0x50] sm:$0xf] %v716_v54  ;;  %v714_v21 = vmul.f32 %v713_v1, %v1479_v43  ;;  %v717_v52 = vmul.f32 %v710_v10, %v1486_v46  ;;  %v683_v7 = vpop.permute.xlu0 %682 }
 0x24d   :  { %v841_v8 = vld [vmem:[#allocation2 + $0x78] sm:$0xff]  ;;  %v838_v55 = vld [vmem:[#allocation2 + $0x60] sm:$0xff] }
 0x24e   :  { %718 = vst [vmem:[#allocation2 + $0x40] sm:$0xf] %v714_v21  ;;  %721 = vst [vmem:[#allocation2 + $0x58] sm:$0xf] %v717_v52  ;;  %964 = vmatprep.subr.mxu1 %v841_v8  ;;  %v685_v45 = vpop.permute.xlu1 %684  ;;  %894 = vmatpush1.msra.mxu0 %v838_v55 }
 0x24f   :  { %v692_v60 = vsel %vm180_vm7, %v683_v7, %v685_v45  ;;  %965 = vmatpush1.msra.mxu1 %v840_v56 }
 0x250   :  { %v695_v57 = vmul.f32 %v692_v60, %v1499_v2  ;;  %v687_v4 = vpop.permute.xlu0 %686 }
 0x251   :  { %v691_v43 = vsel %vm180_vm7, %v685_v45, %v687_v4  ;;  %v835_v46 = vld [vmem:[#allocation2 + $0x48] sm:$0xff] }
 0x252   :  { %699 = vst [vmem:[#allocation2 + $0x28] sm:$0xf] %v695_v57  ;;  %v696_v5 = vmul.f32 %v691_v43, %v1508_v24  ;;  %v689_v59 = vpop.permute.xlu1 %688  ;;  %895 = vmatprep.subr.mxu0 %v835_v46 }
 0x253   :  { %v690_v61 = vsel %vm180_vm7, %v687_v4, %v689_v59  ;;  %v693_v6 = vsel %vm180_vm7, %v689_v59, %v683_v7  ;;  %v836_v17 = vld [vmem:[#allocation2 + $0x50] sm:$0xff] }
 0x254   :  { %700 = vst [vmem:[#allocation2 + $0x30] sm:$0xf] %v696_v5  ;;  %v694_v11 = vmul.f32 %v693_v6, %v1505_v23  ;;  %v697_v2 = vmul.f32 %v690_v61, %v1511_v25  ;;  %v663_v15 = vpop.permute.xlu0 %662 }
 0x255   :  { %v837_v18 = vld [vmem:[#allocation2 + $0x58] sm:$0xff]  ;;  %v834_v30 = vld [vmem:[#allocation2 + $0x40] sm:$0xff] }
 0x256   :  { %698 = vst [vmem:[#allocation2 + $0x20] sm:$0xf] %v694_v11  ;;  %701 = vst [vmem:[#allocation2 + $0x38] sm:$0xf] %v697_v2  ;;  %966 = vmatprep.subr.mxu1 %v837_v18  ;;  %v665_v24 = vpop.permute.xlu1 %664  ;;  %896 = vmatpush1.msra.mxu0 %v834_v30 }
 0x257   :  { %v672_v13 = vsel %vm138_vm8, %v663_v15, %v665_v24  ;;  %967 = vmatpush1.msra.mxu1 %v836_v17 }
 0x258   :  { %v675_v16 = vmul.f32 %v672_v13, %v1524_v49  ;;  %v667_v31 = vpop.permute.xlu0 %666 }
 0x259   :  { %v671_v23 = vsel %vm138_vm8, %v665_v24, %v667_v31  ;;  %v831_v25 = vld [vmem:[#allocation2 + $0x28] sm:$0xff] }
 0x25a   :  { %679 = vst [vmem:[#allocation2 + $0x8] sm:$0xf] %v675_v16  ;;  %v676_v14 = vmul.f32 %v671_v23, %v1533_v22  ;;  %v669_v35 = vpop.permute.xlu1 %668  ;;  %897 = vmatprep.subr.mxu0 %v831_v25 }
 0x25b   :  { %v670_v26 = vsel %vm138_vm8, %v667_v31, %v669_v35  ;;  %v673_v28 = vsel %vm138_vm8, %v669_v35, %v663_v15  ;;  %v832_v22 = vld [vmem:[#allocation2 + $0x30] sm:$0xff] }
 0x25c   :  { %680 = vst [vmem:[#allocation2 + $0x10] sm:$0xf] %v676_v14  ;;  %v674_v29 = vmul.f32 %v673_v28, %v1530_v0  ;;  %v677_v49 = vmul.f32 %v670_v26, %v1536_v3 }
 0x25d   :  { %v830_v33 = vld [vmem:[#allocation2 + $0x20] sm:$0xff]  ;;  %v833_v36 = vld [vmem:[#allocation2 + $0x38] sm:$0xff] }
 0x25e   :  { %678 = vst [vmem:[#allocation2] sm:$0xf] %v674_v29  ;;  %681 = vst [vmem:[#allocation2 + $0x18] sm:$0xf] %v677_v49  ;;  %898 = vmatpush1.msra.mxu0 %v830_v33  ;;  %968 = vmatprep.subr.mxu1 %v833_v36 }
 0x25f   :  { %969 = vmatpush1.msra.mxu1 %v832_v22 }
 0x261   :  { %v827_v19 = vld [vmem:[#allocation2 + $0x8] sm:$0xff] }
 0x262   :  { %899 = vmatprep.subr.mxu0 %v827_v19 }
 0x263   :  { %v828_v12 = vld [vmem:[#allocation2 + $0x10] sm:$0xff] }
 0x265   :  { %v826_v32 = vld [vmem:[#allocation2] sm:$0xff]  ;;  %v829_v37 = vld [vmem:[#allocation2 + $0x18] sm:$0xff] }
 0x266   :  { %900 = vmatpush1.msra.mxu0 %v826_v32  ;;  %970 = vmatprep.subr.mxu1 %v829_v37 }
 0x267   :  { %1066 = vmatmul.mubr.msk.f32.vlgmr.msra.gmra.mxu0 %vm510_vm9, %v661_v20  ;;  %971 = vmatpush1.msra.mxu1 %v828_v12 }
 0x268   :  { %1067 = vmatmul.mubr.msk.f32.vlgmr.msra.gmra.mxu1 %vm510_vm9, %v661_v20 }
 0x327   :  { %v935_v0 = vpop.f32.mrf.mxu0 }
 0x328   :  { %v1068_v3 = vmul.f32 -1.442695, %v935_v0  ;;  %v1006_v27 = vpop.f32.mrf.mxu1 }
 0x329   :  { %v1070_v48 = vmul.f32 -1.442695, %v1006_v27  ;;  %v937_v39 = vpop.f32.mrf.mxu0 }
 0x32a   :  { %1094 = vpow2.f32 %v1068_v3  ;;  %v1069_v40 = vmul.f32 -1.442695, %v937_v39  ;;  %v1008_v41 = vpop.f32.mrf.mxu1 }
 0x32b   :  { %1096 = vpow2.f32 %v1070_v48  ;;  %v1071_v44 = vmul.f32 -1.442695, %v1008_v41 }
 0x32c   :  { %1098 = vpow2.f32 %v1069_v40 }
 0x32d   :  { %1100 = vpow2.f32 %v1071_v44 }
 0x337   :  { %v1095_v62 = vpop.eup %1094 }
 0x338   :  { %v1097_v38 = vpop.eup %1096  ;;  %v1023_v47 = vadd.f32 1.0, %v1095_v62 }
 0x339   :  { %v1099_v50 = vpop.eup %1098  ;;  %v1025_v58 = vadd.f32 1.0, %v1097_v38 }
 0x33a   :  { %v1101_v63 = vpop.eup %1100  ;;  %1102 = vrcp.f32 %v1023_v47  ;;  %v1024_v51 = vadd.f32 1.0, %v1099_v50 }
 0x33b   :  { %1104 = vrcp.f32 %v1025_v58  ;;  %v1026_v34 = vadd.f32 1.0, %v1101_v63 }
 0x33c   :  { %1106 = vrcp.f32 %v1024_v51 }
 0x33d   :  { %1108 = vrcp.f32 %v1026_v34 }
 0x347   :  { %v1103_v42 = vpop.eup %1102 }
 0x348   :  { %v1105_v53 = vpop.eup %1104 }
 0x349   :  { %v1107_v54 = vpop.eup %1106 }
 0x34a   :  { %v1109_v9 = vpop.eup %1108  ;;  %v1037_v10 = vcombine.low %v1103_v42, %v1107_v54 }
 0x34b   :  { %v1042_v1 = vcombine.low %v1105_v53, %v1109_v9 }
 0x34c   :  { %1039 = vst [vmem:[#allocation9] sm:$0xff] %v1037_v10 }
 0x34d   :  { %1045 = vst [vmem:[#allocation9 + $0x8] sm:$0xff] %v1042_v1 }
 0x34e   :  { %1181 = shalt.err (!%p1178_p5)
}
 0x34f   :  { %1057 = dma.vmem_to_hbm [thread:$0]  %s1052_s12, 256, %s1694_s3, [#allocation5], %s1200_s22, %s1200_s22, %s1201_s23  }
 0x350   :  { %1194 = dma.done.wait [#allocation5], 256  }
 0x351   :  { %1195 = vsyncadd [#allocation5], 4294967040 }
 0x352   :  { %1061 = vsyncpa [#allocation4], 1 }
 0x353   :  { %1062 = vsyncpa [#allocation7], 1 }
 0x354   :  { %1063 = vsyncpa [#allocation5], 1 }

</bundles_post_ra>
